<compile_context>
chip_gen: v6e
topology: v6e:2x2x1
jax: 0.10.0
libtpu: 0.0.40
codegen_flags: <defaults>
</compile_context>

<pallas_src>
import jax
import jax.numpy as jnp
from jax import lax
from jax.experimental import pallas as pl
from jax.experimental.pallas import tpu as pltpu

BATCH = 2          # rows of X
FEAT = 20          # LazyLinear(20), rand_weight (20, 20)
ROW_PAD = 8        # sublane tile
LANE_PAD = 128     # lane tile


def fixed_hidden_mlp_kernel(x_ref, p_ref, o_ref):
    xp = x_ref[...]                                       # (8,128)   X, zero-padded
    wp = p_ref[0:LANE_PAD, :]                             # (128,128) shared linear W, zero-padded
    rwp = p_ref[LANE_PAD:2 * LANE_PAD, :]                 # (128,128) fixed random weight, zero-padded
    bp = p_ref[2 * LANE_PAD:2 * LANE_PAD + ROW_PAD, :]    # (8,128)   bias on the BATCH real rows only

    # X = self.linear(X)        (padded rows/lanes stay exactly zero here)
    h = jnp.dot(xp, wp, preferred_element_type=jnp.float32) + bp
    # X = relu(X @ rand_weight + 1)
    # The +1 puts 1.0 into padded rows/lanes; the zero-padded rows of wp annihilate
    # the padded lanes in the next matmul, and the padded rows are masked below.
    h = jnp.maximum(jnp.dot(h, rwp, preferred_element_type=jnp.float32) + 1.0, 0.0)
    # X = self.linear(X)        (same shared parameters applied again)
    h = jnp.dot(h, wp, preferred_element_type=jnp.float32) + bp

    # Mask padded batch rows before any reduction (padded feature lanes are already 0).
    row = lax.broadcasted_iota(jnp.int32, (ROW_PAD, LANE_PAD), 0)
    h = jnp.where(row < BATCH, h, 0.0)

    # while X.abs().sum() > 1: X /= 2   -> closed form.
    # Number of halvings k = max(0, E + (mantissa != 0)) where s_abs = 1.m * 2^E,
    # i.e. exact ceil(log2(s_abs)) clamped at 0.  Exponent-bit extraction (not float
    # log2) keeps it bit-exact at power-of-two boundaries (e.g. s_abs == 2.0 -> k == 1).
    s_abs = jnp.sum(jnp.abs(h))
    bits = pltpu.bitcast(jnp.broadcast_to(s_abs, (ROW_PAD, LANE_PAD)), jnp.int32)
    exp_biased = (bits >> 23) & 0xFF
    mant = bits & 0x7FFFFF
    k = jnp.maximum(exp_biased - 127 + (mant != 0).astype(jnp.int32), 0)

    # 2^-k built exactly from exponent bits; split k into two halves so each factor
    # is a normal float even for k up to 128 (s_abs < 2^128).
    k1 = k >> 1
    k2 = k - k1
    p1 = pltpu.bitcast((127 - k1) << 23, jnp.float32)
    p2 = pltpu.bitcast((127 - k2) << 23, jnp.float32)

    # Scaling by exact powers of two is exact (same as the loop's repeated /2, up to
    # fp32 underflow into subnormals, which the original loop shares anyway).
    o_ref[0, 0] = jnp.sum(h * p1 * p2)


def pack_params(w, b, rand_w):
    """One-time packing of the fixed parameters into a single tile-aligned slab.

    Layout ((2*128 + 8) rows x 128 lanes, f32):
      rows [0, 128)    : shared linear weight W (in, out) zero-padded   -> linear(x) = x @ W + b
      rows [128, 256)  : fixed random weight, zero-padded
      rows [256, 264)  : bias replicated onto the BATCH real rows, zero elsewhere
    The zero padding of the weight rows/cols is load-bearing for correctness
    (it annihilates the relu(+1) values living in the padded feature lanes).
    """
    p = jnp.zeros((2 * LANE_PAD + ROW_PAD, LANE_PAD), jnp.float32)
    p = p.at[0:FEAT, 0:FEAT].set(w)
    p = p.at[LANE_PAD:LANE_PAD + FEAT, 0:FEAT].set(rand_w)
    p = p.at[2 * LANE_PAD:2 * LANE_PAD + BATCH, 0:FEAT].set(jnp.broadcast_to(b, (BATCH, FEAT)))
    return p


def pack_x(x):
    """Zero-pad the (BATCH, FEAT) activation to one (8, 128) tile."""
    return jnp.zeros((ROW_PAD, LANE_PAD), jnp.float32).at[0:BATCH, 0:FEAT].set(x)


@jax.jit
def fixed_hidden_mlp(x_pad, params):
    """Whole FixedHiddenMLP forward in one Pallas invocation; returns a scalar."""
    out = pl.pallas_call(
        fixed_hidden_mlp_kernel,
        out_shape=jax.ShapeDtypeStruct((1, 1), jnp.float32),
        in_specs=[
            pl.BlockSpec(memory_space=pltpu.MemorySpace.VMEM),  # padded X        (8, 128)
            pl.BlockSpec(memory_space=pltpu.MemorySpace.VMEM),  # packed params   (264, 128)
        ],
        out_specs=pl.BlockSpec(memory_space=pltpu.MemorySpace.SMEM),  # (1,1) scalar result
    )(x_pad, params)
    return out[0, 0]


def reference(x, w, b, rand_w):
    """Pure-JAX reference of the PyTorch forward, for a sanity check."""
    h = x @ w + b
    h = jnp.maximum(h @ rand_w + 1.0, 0.0)
    h = h @ w + b

    def cond(hc):
        return jnp.sum(jnp.abs(hc)) > 1.0

    def body(hc):
        return hc / 2.0

    h = lax.while_loop(cond, body, h)
    return jnp.sum(h)


if __name__ == "__main__":
    key = jax.random.PRNGKey(0)
    kx, kw, kb, kr = jax.random.split(key, 4)

    # Shapes implied by the module: X (2, 20), LazyLinear(20) -> W (20, 20), b (20),
    # rand_weight (20, 20). W stored as (in, out) so linear(x) = x @ W + b matches
    # PyTorch's x @ weight.T + bias with weight = W.T.
    x = jax.random.uniform(kx, (BATCH, FEAT), dtype=jnp.float32)
    w = jax.random.uniform(kw, (FEAT, FEAT), dtype=jnp.float32, minval=-0.2, maxval=0.2)
    b = jax.random.uniform(kb, (FEAT,), dtype=jnp.float32, minval=-0.2, maxval=0.2)
    rand_w = jax.random.uniform(kr, (FEAT, FEAT), dtype=jnp.float32)

    params = pack_params(w, b, rand_w)   # packed once; reused across calls
    x_pad = pack_x(x)

    out = fixed_hidden_mlp(x_pad, params)
    out = jax.block_until_ready(out)

    ref = jax.block_until_ready(reference(x, w, b, rand_w))
    assert jnp.allclose(out, ref, rtol=1e-5, atol=1e-5), (out, ref)

    print("KERNEL_OK")
</pallas_src>

<mosaic_0001>
module attributes {stable_mosaic.version = 11 : i64} {
  func.func @fixed_hidden_mlp_kernel(%arg0: memref<8x128xf32, #tpu.memory_space<vmem>>, %arg1: memref<264x128xf32, #tpu.memory_space<vmem>>, %arg2: memref<1x1xf32, #tpu.memory_space<smem>>) attributes {dimension_semantics = [], scalar_prefetch = 0 : i64, scratch_operands = 0 : i64, tpu.core_type = #tpu.core_type<tc>} {
    %c0 = arith.constant 0 : index
    %c0_0 = arith.constant 0 : index
    %0 = vector.load %arg0[%c0, %c0_0] : memref<8x128xf32, #tpu.memory_space<vmem>>, vector<8x128xf32>
    %c0_1 = arith.constant 0 : index
    %c0_2 = arith.constant 0 : index
    %1 = vector.load %arg1[%c0_1, %c0_2] : memref<264x128xf32, #tpu.memory_space<vmem>>, vector<128x128xf32>
    %c128 = arith.constant 128 : index
    %c0_3 = arith.constant 0 : index
    %2 = vector.load %arg1[%c128, %c0_3] : memref<264x128xf32, #tpu.memory_space<vmem>>, vector<128x128xf32>
    %c256 = arith.constant 256 : index
    %c0_4 = arith.constant 0 : index
    %3 = vector.load %arg1[%c256, %c0_4] : memref<264x128xf32, #tpu.memory_space<vmem>>, vector<8x128xf32>
    %cst = arith.constant dense<0.000000e+00> : vector<8x128xf32>
    %4 = tpu.matmul %0, %1, %cst {dimension_numbers = #tpu.dot_dimension_numbers<[1], [0], [0], [1], [0, 0, 1, 1], [], []>} : vector<8x128xf32>, vector<128x128xf32>, vector<8x128xf32> -> vector<8x128xf32>
    %5 = arith.addf %4, %3 : vector<8x128xf32>
    %cst_5 = arith.constant dense<0.000000e+00> : vector<8x128xf32>
    %6 = tpu.matmul %5, %2, %cst_5 {dimension_numbers = #tpu.dot_dimension_numbers<[1], [0], [0], [1], [0, 0, 1, 1], [], []>} : vector<8x128xf32>, vector<128x128xf32>, vector<8x128xf32> -> vector<8x128xf32>
    %cst_6 = arith.constant 1.000000e+00 : f32
    %7 = vector.broadcast %cst_6 : f32 to vector<8x128xf32>
    %8 = arith.addf %6, %7 : vector<8x128xf32>
    %cst_7 = arith.constant 0.000000e+00 : f32
    %9 = vector.broadcast %cst_7 : f32 to vector<8x128xf32>
    %10 = arith.maximumf %8, %9 : vector<8x128xf32>
    %cst_8 = arith.constant dense<0.000000e+00> : vector<8x128xf32>
    %11 = tpu.matmul %10, %1, %cst_8 {dimension_numbers = #tpu.dot_dimension_numbers<[1], [0], [0], [1], [0, 0, 1, 1], [], []>} : vector<8x128xf32>, vector<128x128xf32>, vector<8x128xf32> -> vector<8x128xf32>
    %12 = arith.addf %11, %3 : vector<8x128xf32>
    %13 = tpu.iota {dimensions = array<i32: 0>} : vector<8x128xi32>
    %c2_i32 = arith.constant 2 : i32
    %14 = vector.broadcast %c2_i32 : i32 to vector<8x128xi32>
    %15 = arith.cmpi slt, %13, %14 : vector<8x128xi32>
    %cst_9 = arith.constant 0.000000e+00 : f32
    %16 = vector.broadcast %cst_9 : f32 to vector<8x128xf32>
    %17 = arith.select %15, %12, %16 : vector<8x128xi1>, vector<8x128xf32>
    %18 = math.absf %17 : vector<8x128xf32>
    %19 = vector.shape_cast %18 : vector<8x128xf32> to vector<1x8x128xf32>
    %cst_10 = arith.constant dense<0.000000e+00> : vector<1xf32>
    %20 = vector.multi_reduction <add>, %19, %cst_10 [1, 2] : vector<1x8x128xf32> to vector<1xf32>
    %21 = vector.shape_cast %20 : vector<1xf32> to vector<1x1x1xf32>
    %22 = vector.extract %21[0, 0, 0] : f32 from vector<1x1x1xf32>
    %23 = vector.broadcast %22 : f32 to vector<8x128xf32>
    %24 = tpu.bitcast %23 : vector<8x128xf32> -> vector<8x128xi32>
    %c23_i32 = arith.constant 23 : i32
    %25 = vector.broadcast %c23_i32 : i32 to vector<8x128xi32>
    %26 = arith.shrsi %24, %25 : vector<8x128xi32>
    %c255_i32 = arith.constant 255 : i32
    %27 = vector.broadcast %c255_i32 : i32 to vector<8x128xi32>
    %28 = arith.andi %26, %27 : vector<8x128xi32>
    %c8388607_i32 = arith.constant 8388607 : i32
    %29 = vector.broadcast %c8388607_i32 : i32 to vector<8x128xi32>
    %30 = arith.andi %24, %29 : vector<8x128xi32>
    %c127_i32 = arith.constant 127 : i32
    %31 = vector.broadcast %c127_i32 : i32 to vector<8x128xi32>
    %32 = arith.subi %28, %31 : vector<8x128xi32>
    %c0_i32 = arith.constant 0 : i32
    %33 = vector.broadcast %c0_i32 : i32 to vector<8x128xi32>
    %34 = arith.cmpi ne, %30, %33 : vector<8x128xi32>
    %35 = arith.extui %34 : vector<8x128xi1> to vector<8x128xi32>
    %36 = arith.addi %32, %35 : vector<8x128xi32>
    %c0_i32_11 = arith.constant 0 : i32
    %37 = vector.broadcast %c0_i32_11 : i32 to vector<8x128xi32>
    %38 = arith.maxsi %36, %37 : vector<8x128xi32>
    %c1_i32 = arith.constant 1 : i32
    %39 = vector.broadcast %c1_i32 : i32 to vector<8x128xi32>
    %40 = arith.shrsi %38, %39 : vector<8x128xi32>
    %41 = arith.subi %38, %40 : vector<8x128xi32>
    %c127_i32_12 = arith.constant 127 : i32
    %42 = vector.broadcast %c127_i32_12 : i32 to vector<8x128xi32>
    %43 = arith.subi %42, %40 : vector<8x128xi32>
    %c23_i32_13 = arith.constant 23 : i32
    %44 = vector.broadcast %c23_i32_13 : i32 to vector<8x128xi32>
    %45 = arith.shli %43, %44 : vector<8x128xi32>
    %46 = tpu.bitcast %45 : vector<8x128xi32> -> vector<8x128xf32>
    %c127_i32_14 = arith.constant 127 : i32
    %47 = vector.broadcast %c127_i32_14 : i32 to vector<8x128xi32>
    %48 = arith.subi %47, %41 : vector<8x128xi32>
    %c23_i32_15 = arith.constant 23 : i32
    %49 = vector.broadcast %c23_i32_15 : i32 to vector<8x128xi32>
    %50 = arith.shli %48, %49 : vector<8x128xi32>
    %51 = tpu.bitcast %50 : vector<8x128xi32> -> vector<8x128xf32>
    %52 = arith.mulf %17, %46 : vector<8x128xf32>
    %53 = arith.mulf %52, %51 : vector<8x128xf32>
    %54 = vector.shape_cast %53 : vector<8x128xf32> to vector<1x8x128xf32>
    %cst_16 = arith.constant dense<0.000000e+00> : vector<1xf32>
    %55 = vector.multi_reduction <add>, %54, %cst_16 [1, 2] : vector<1x8x128xf32> to vector<1xf32>
    %56 = vector.shape_cast %55 : vector<1xf32> to vector<1x1x1xf32>
    %57 = vector.extract %56[0, 0, 0] : f32 from vector<1x1x1xf32>
    %c0_17 = arith.constant 0 : index
    %c0_18 = arith.constant 0 : index
    %58 = memref.load %arg2[%c0_17, %c0_18] : memref<1x1xf32, #tpu.memory_space<smem>>
    memref.store %57, %arg2[%c0_17, %c0_18] : memref<1x1xf32, #tpu.memory_space<smem>>
    return
  }
}

</mosaic_0001>

<bundles_post_ra>
// kernel: fixed_hidden_mlp.1
= control target key start
LH: loop header
LB: loop body
LE: loop exit
PB: predicated region body
PF: predicated region fallthrough
CT: control target
= control target key end

     0   :  { %7 = vsyncpa [#allocation3], 0  ;;  %s697_s0 = inlined_call_operand.hbm [shape: f32[8,128], index: 0, kind: input, shape index: {}]   ;;  %s698_s1 = inlined_call_operand.hbm [shape: f32[264,128], index: 1, kind: input, shape index: {}]   ;;  %s699_s2 = inlined_call_operand.hbm [shape: f32[1,1], index: 2, kind: output, shape index: {}]  }
   0x1   :  { %8 = vsyncpa [#allocation6], 0 }
   0x2   :  { %9 = vsyncpa [#allocation4], 0  ;;  %s567_s9 = smov [#allocation2]   ;;  %s568_s11 = smov [#allocation5]  }
   0x3   :  { %s16_s10 = sshll.u32 %s567_s9, 4  ;;  %s25_s12 = sshll.u32 %s568_s11, 4  ;;  %s17_s10 = int_to_ptr.vmem [resolvable:$true] %s16_s10  ;;  %s26_s12 = int_to_ptr.vmem [resolvable:$true] %s25_s12 }
   0x4   :  { %s521_s13 = scalar_lea.vmem %s17_s10, 128  ;;  %p526_p1 = scmp.lt.s32.totalorder %s17_s10, %s17_s10 }
   0x5   :  { %p522_p0 = scmp.ne.s32.totalorder %s17_s10, %s521_s13  ;;  %p527_p2 = scmp.lt.s32.totalorder %s521_s13, %s521_s13 }
   0x7   :  { %p528_p3 = por %p527_p2, %p526_p1 }
   0x9   :  { %p529_p4 = pnand %p528_p3, %p522_p0 }
   0xb   :  { %532 = shalt.err (!%p529_p4)
}
   0xc   :  { %19 = dma.hbm_to_vmem [thread:$0]  %s697_s0, 128, %s17_s10, [#allocation3]  }
   0xd   :  { %s541_s16 = scalar_lea.vmem %s26_s12, 4224  ;;  %p546_p6 = scmp.lt.s32.totalorder %s26_s12, %s26_s12 }
   0xe   :  { %p542_p5 = scmp.ne.s32.totalorder %s26_s12, %s541_s16  ;;  %p547_p7 = scmp.lt.s32.totalorder %s541_s16, %s541_s16 }
  0x10   :  { %p548_p8 = por %p547_p7, %p546_p6 }
  0x12   :  { %p549_p9 = pnand %p548_p8, %p542_p5 }
  0x14   :  { %552 = shalt.err (!%p549_p9)
}
  0x15   :  { %s569_s17 = smov 128   ;;  %s570_s18 = smov 8  }
  0x16   :  { %31 = dma.hbm_to_vmem [thread:$0]  %s698_s1, 4224, %s26_s12, [#allocation6], %s569_s17, %s569_s17, %s570_s18  }
  0x17   :  { %561 = dma.done.wait [#allocation3], 128  }
  0x18   :  { %562 = vsyncadd [#allocation3], 4294967168 }
  0x19   :  { %563 = dma.done.wait [#allocation6], 4224  }
  0x1a   :  { %564 = vsyncadd [#allocation6], 4294963072  ;;  %v571_v0 = vmov 0.0   ;;  %vm572_vm0 = vmmov 0   ;;  %v602_v1 = vld [vmem:[#allocation5 + $0x78] sm:$0xff]  ;;  %v604_v2 = vld [vmem:[#allocation5 + $0x70] sm:$0xff]  ;;  %v283_v42 = vlaneseq }
  0x1b   :  { %396 = vmatprep.subr.mxu0 %v571_v0  ;;  %428 = vmatprep.mubr.msk.f32.mxu0 %vm572_vm0, %v571_v0  ;;  %v608_v3 = vld [vmem:[#allocation5 + $0x68] sm:$0xff]  ;;  %v612_v4 = vld [vmem:[#allocation5 + $0x60] sm:$0xff]  ;;  %v70_v5 = vld [vmem:[#allocation5 + $0xf8] sm:$0xff]  ;;  %v573_v61 = vmov 0   ;;  %s574_s21 = smov [#allocation7]  }
  0x1c   :  { %431 = vmatprep.subr.mxu1 %v571_v0  ;;  %463 = vmatprep.mubr.msk.f32.mxu1 %vm572_vm0, %v571_v0  ;;  %v616_v6 = vld [vmem:[#allocation5 + $0x58] sm:$0xff]  ;;  %v69_v7 = vld [vmem:[#allocation5 + $0xf0] sm:$0xff]  ;;  %v68_v8 = vld [vmem:[#allocation5 + $0xe8] sm:$0xff]  ;;  %v284_v43 = vshrl.u32 %v283_v42, 7 }
  0x1d   :  { %397 = vmatpush3.msra.mxu0 %v602_v1  ;;  %432 = vmatpush3.msra.mxu1 %v70_v5  ;;  %v621_v9 = vld [vmem:[#allocation5 + $0x50] sm:$0xff]  ;;  %v67_v10 = vld [vmem:[#allocation5 + $0xe0] sm:$0xff]  ;;  %v626_v11 = vld [vmem:[#allocation5 + $0x48] sm:$0xff] }
  0x1e   :  { %398 = vmatprep.subr.mxu0 %v571_v0  ;;  %433 = vmatprep.subr.mxu1 %v571_v0  ;;  %v66_v12 = vld [vmem:[#allocation5 + $0xd8] sm:$0xff]  ;;  %v631_v13 = vld [vmem:[#allocation5 + $0x40] sm:$0xff]  ;;  %v65_v14 = vld [vmem:[#allocation5 + $0xd0] sm:$0xff]  ;;  %vm285_vm1 = vcmp.lt.s32.totalorder %v284_v43, 2 }
  0x1f   :  { %399 = vmatpush3.msra.mxu0 %v604_v2  ;;  %434 = vmatpush3.msra.mxu1 %v69_v7  ;;  %v636_v15 = vld [vmem:[#allocation5 + $0x38] sm:$0xff]  ;;  %v64_v16 = vld [vmem:[#allocation5 + $0xc8] sm:$0xff]  ;;  %v641_v17 = vld [vmem:[#allocation5 + $0x30] sm:$0xff] }
  0x20   :  { %400 = vmatprep.subr.mxu0 %v571_v0  ;;  %435 = vmatprep.subr.mxu1 %v571_v0  ;;  %v63_v18 = vld [vmem:[#allocation5 + $0xc0] sm:$0xff]  ;;  %v646_v19 = vld [vmem:[#allocation5 + $0x28] sm:$0xff]  ;;  %v62_v20 = vld [vmem:[#allocation5 + $0xb8] sm:$0xff] }
  0x21   :  { %401 = vmatpush3.msra.mxu0 %v608_v3  ;;  %436 = vmatpush3.msra.mxu1 %v68_v8  ;;  %v43_v21 = vld [vmem:[#allocation5 + $0x20] sm:$0xff]  ;;  %v61_v22 = vld [vmem:[#allocation5 + $0xb0] sm:$0xff]  ;;  %v42_v23 = vld [vmem:[#allocation5 + $0x18] sm:$0xff] }
  0x22   :  { %402 = vmatprep.subr.mxu0 %v571_v0  ;;  %437 = vmatprep.subr.mxu1 %v571_v0  ;;  %v60_v24 = vld [vmem:[#allocation5 + $0xa8] sm:$0xff]  ;;  %v41_v25 = vld [vmem:[#allocation5 + $0x10] sm:$0xff]  ;;  %v59_v26 = vld [vmem:[#allocation5 + $0xa0] sm:$0xff] }
  0x23   :  { %403 = vmatpush3.msra.mxu0 %v612_v4  ;;  %438 = vmatpush3.msra.mxu1 %v67_v10  ;;  %v40_v27 = vld [vmem:[#allocation5 + $0x8] sm:$0xff]  ;;  %v58_v28 = vld [vmem:[#allocation5 + $0x98] sm:$0xff]  ;;  %v39_v29 = vld [vmem:[#allocation5] sm:$0xff] }
  0x24   :  { %404 = vmatprep.subr.mxu0 %v571_v0  ;;  %439 = vmatprep.subr.mxu1 %v571_v0  ;;  %v38_v30 = vld [vmem:[#allocation2] sm:$0xff]  ;;  %v57_v31 = vld [vmem:[#allocation5 + $0x90] sm:$0xff]  ;;  %v56_v32 = vld [vmem:[#allocation5 + $0x88] sm:$0xff] }
  0x25   :  { %405 = vmatpush3.msra.mxu0 %v616_v6  ;;  %440 = vmatpush3.msra.mxu1 %v66_v12  ;;  %v55_v33 = vld [vmem:[#allocation5 + $0x80] sm:$0xff] }
  0x26   :  { %406 = vmatprep.subr.mxu0 %v571_v0  ;;  %441 = vmatprep.subr.mxu1 %v571_v0  ;;  %v71_v34 = vld [vmem:[#allocation5 + $0x100] sm:$0xff] }
  0x27   :  { %407 = vmatpush3.msra.mxu0 %v621_v9  ;;  %442 = vmatpush3.msra.mxu1 %v65_v14 }
  0x28   :  { %408 = vmatprep.subr.mxu0 %v571_v0  ;;  %443 = vmatprep.subr.mxu1 %v571_v0 }
  0x29   :  { %409 = vmatpush3.msra.mxu0 %v626_v11  ;;  %444 = vmatpush3.msra.mxu1 %v64_v16 }
  0x2a   :  { %410 = vmatprep.subr.mxu0 %v571_v0  ;;  %445 = vmatprep.subr.mxu1 %v571_v0 }
  0x2b   :  { %411 = vmatpush3.msra.mxu0 %v631_v13  ;;  %446 = vmatpush3.msra.mxu1 %v63_v18 }
  0x2c   :  { %412 = vmatprep.subr.mxu0 %v571_v0  ;;  %447 = vmatprep.subr.mxu1 %v571_v0 }
  0x2d   :  { %413 = vmatpush3.msra.mxu0 %v636_v15  ;;  %448 = vmatpush3.msra.mxu1 %v62_v20 }
  0x2e   :  { %414 = vmatprep.subr.mxu0 %v571_v0  ;;  %449 = vmatprep.subr.mxu1 %v571_v0 }
  0x2f   :  { %415 = vmatpush3.msra.mxu0 %v641_v17  ;;  %450 = vmatpush3.msra.mxu1 %v61_v22 }
  0x30   :  { %416 = vmatprep.subr.mxu0 %v571_v0  ;;  %451 = vmatprep.subr.mxu1 %v571_v0 }
  0x31   :  { %417 = vmatpush3.msra.mxu0 %v646_v19  ;;  %452 = vmatpush3.msra.mxu1 %v60_v24 }
  0x32   :  { %418 = vmatprep.subr.mxu0 %v571_v0  ;;  %453 = vmatprep.subr.mxu1 %v571_v0 }
  0x33   :  { %419 = vmatpush3.msra.mxu0 %v43_v21  ;;  %454 = vmatpush3.msra.mxu1 %v59_v26 }
  0x34   :  { %420 = vmatprep.subr.mxu0 %v571_v0  ;;  %455 = vmatprep.subr.mxu1 %v571_v0 }
  0x35   :  { %421 = vmatpush3.msra.mxu0 %v42_v23  ;;  %456 = vmatpush3.msra.mxu1 %v58_v28 }
  0x36   :  { %422 = vmatprep.subr.mxu0 %v571_v0  ;;  %457 = vmatprep.subr.mxu1 %v571_v0 }
  0x37   :  { %423 = vmatpush3.msra.mxu0 %v41_v25  ;;  %458 = vmatpush3.msra.mxu1 %v57_v31 }
  0x38   :  { %424 = vmatprep.subr.mxu0 %v571_v0  ;;  %459 = vmatprep.subr.mxu1 %v571_v0 }
  0x39   :  { %425 = vmatpush3.msra.mxu0 %v40_v27  ;;  %460 = vmatpush3.msra.mxu1 %v56_v32 }
  0x3a   :  { %426 = vmatprep.subr.mxu0 %v571_v0  ;;  %461 = vmatprep.subr.mxu1 %v571_v0 }
  0x3b   :  { %427 = vmatpush3.msra.mxu0 %v39_v29  ;;  %462 = vmatpush3.msra.mxu1 %v55_v33 }
  0x3c   :  { %429 = vmatmul.mubr.f32.vlgmr.msra.gmra.mxu0 %v38_v30  ;;  %466 = vmatprep.subr.mxu0 %v571_v0 }
  0x3d   :  { %467 = vmatpush3.msra.mxu0 %v602_v1  ;;  %498 = vmatprep.mubr.msk.f32.mxu0 %vm572_vm0, %v571_v0 }
  0x3e   :  { %468 = vmatprep.subr.mxu0 %v571_v0 }
  0x3f   :  { %469 = vmatpush3.msra.mxu0 %v604_v2 }
  0x40   :  { %470 = vmatprep.subr.mxu0 %v571_v0 }
  0x41   :  { %471 = vmatpush3.msra.mxu0 %v608_v3 }
  0x42   :  { %472 = vmatprep.subr.mxu0 %v571_v0 }
  0x43   :  { %473 = vmatpush3.msra.mxu0 %v612_v4 }
  0x44   :  { %474 = vmatprep.subr.mxu0 %v571_v0 }
  0x45   :  { %475 = vmatpush3.msra.mxu0 %v616_v6 }
  0x46   :  { %476 = vmatprep.subr.mxu0 %v571_v0 }
  0x47   :  { %477 = vmatpush3.msra.mxu0 %v621_v9 }
  0x48   :  { %478 = vmatprep.subr.mxu0 %v571_v0 }
  0x49   :  { %479 = vmatpush3.msra.mxu0 %v626_v11 }
  0x4a   :  { %480 = vmatprep.subr.mxu0 %v571_v0 }
  0x4b   :  { %481 = vmatpush3.msra.mxu0 %v631_v13 }
  0x4c   :  { %482 = vmatprep.subr.mxu0 %v571_v0 }
  0x4d   :  { %483 = vmatpush3.msra.mxu0 %v636_v15 }
  0x4e   :  { %484 = vmatprep.subr.mxu0 %v571_v0 }
  0x4f   :  { %485 = vmatpush3.msra.mxu0 %v641_v17 }
  0x50   :  { %486 = vmatprep.subr.mxu0 %v571_v0 }
  0x51   :  { %487 = vmatpush3.msra.mxu0 %v646_v19 }
  0x52   :  { %488 = vmatprep.subr.mxu0 %v571_v0 }
  0x53   :  { %489 = vmatpush3.msra.mxu0 %v43_v21 }
  0x54   :  { %490 = vmatprep.subr.mxu0 %v571_v0 }
  0x55   :  { %491 = vmatpush3.msra.mxu0 %v42_v23 }
  0x56   :  { %492 = vmatprep.subr.mxu0 %v571_v0 }
  0x57   :  { %493 = vmatpush3.msra.mxu0 %v41_v25 }
  0x58   :  { %494 = vmatprep.subr.mxu0 %v571_v0 }
  0x59   :  { %495 = vmatpush3.msra.mxu0 %v40_v27 }
  0x5a   :  { %496 = vmatprep.subr.mxu0 %v571_v0 }
  0x5b   :  { %497 = vmatpush3.msra.mxu0 %v39_v29 }
  0xfc   :  { %v138_v35 = vpop.f32.mrf.mxu0 }
  0xfd   :  { %v139_v36 = vadd.f32 %v138_v35, %v71_v34 }
  0xfe   :  { %v430_v37 = vpop.f32.mrf.mxu0 }
  0xff   :  { %464 = vmatmul.mubr.f32.vlgmr.msra.gmra.mxu1 %v139_v36 }
 0x1bf   :  { %v208_v38 = vpop.f32.mrf.mxu1 }
 0x1c0   :  { %v209_v39 = vadd.f32 1.0, %v208_v38 }
 0x1c1   :  { %v465_v40 = vpop.f32.mrf.mxu1 }
 0x1c2   :  { %v212_v41 = vmax.f32 %v209_v39, 0.0 }
 0x1c4   :  { %499 = vmatmul.mubr.f32.vlgmr.msra.gmra.mxu0 %v212_v41 }
 0x284   :  { %v279_v44 = vpop.f32.mrf.mxu0 }
 0x285   :  { %v280_v45 = vadd.f32 %v279_v44, %v71_v34 }
 0x286   :  { %v500_v46 = vpop.f32.mrf.mxu0 }
 0x287   :  { %v286_v47 = vsel %vm285_vm1, %v280_v45, 0.0 }
 0x288   :  { %v287_v48 = vand.u32 2147483647, %v286_v47 }
 0x28a   :  { %288 = vadd.xlane.f32.xlu0 %v287_v48 }
 0x313   :  { %v289_v49 = vpop.xlane.xlu0 %288 }
 0x314   :  { %v290_v50 = vrot.slane %v289_v49, 4 }
 0x316   :  { %v291_v51 = vadd.f32 %v290_v50, %v289_v49 }
 0x318   :  { %v292_v52 = vrot.slane %v291_v51, 2 }
 0x31a   :  { %v293_v53 = vadd.f32 %v292_v52, %v291_v51 }
 0x31c   :  { %v294_v54 = vrot.slane %v293_v53, 1 }
 0x31e   :  { %v295_v55 = vadd.f32 %v294_v54, %v293_v53 }
 0x320   :  { %501 = vpush %v295_v55 }
 0x351   :  { %s502_s0 = spop %501 }
 0x352   :  { %v297_v56 = vstv %s502_s0 }
 0x353   :  { %v299_v57 = vshra.s32 %v297_v56, 23  ;;  %v301_v58 = vand.u32 8388607, %v297_v56 }
 0x355   :  { %v300_v59 = vand.u32 255, %v299_v57  ;;  %vm303_vm2 = vcmp.ne.s32.totalorder %v301_v58, 0 }
 0x356   :  { %v304_v62 = vsel %vm303_vm2, 1, %v573_v61 }
 0x357   :  { %v344_v60 = vadd.s32 4294967169, %v300_v59 }
 0x359   :  { %v305_v63 = vadd.s32 %v344_v60, %v304_v62 }
 0x35b   :  { %vm306_vm3 = vcmp.gt.s32.totalorder %v305_v63, 0 }
 0x35c   :  { %v307_v0 = vsel %vm306_vm3, %v305_v63, 0 }
 0x35d   :  { %v308_v1 = vshra.s32 %v307_v0, 1 }
 0x35f   :  { %v309_v2 = vsub.s32 %v307_v0, %v308_v1  ;;  %v310_v3 = vsub.s32 127, %v308_v1 }
 0x361   :  { %v311_v4 = vshll.u32 %v310_v3, 23  ;;  %v313_v5 = vsub.s32 127, %v309_v2 }
 0x363   :  { %v314_v6 = vshll.u32 %v313_v5, 23  ;;  %v316_v7 = vmul.f32 %v311_v4, %v286_v47 }
 0x365   :  { %v317_v8 = vmul.f32 %v316_v7, %v314_v6 }
 0x367   :  { %318 = vadd.xlane.f32.xlu0 %v317_v8 }
 0x3f0   :  { %v319_v9 = vpop.xlane.xlu0 %318 }
 0x3f1   :  { %v320_v10 = vrot.slane %v319_v9, 4 }
 0x3f3   :  { %v321_v11 = vadd.f32 %v320_v10, %v319_v9 }
 0x3f5   :  { %v322_v12 = vrot.slane %v321_v11, 2 }
 0x3f7   :  { %v323_v13 = vadd.f32 %v322_v12, %v321_v11 }
 0x3f9   :  { %v324_v14 = vrot.slane %v323_v13, 1 }
 0x3fb   :  { %v325_v15 = vadd.f32 %v324_v14, %v323_v13 }
 0x3fd   :  { %503 = vpush %v325_v15 }
 0x42e   :  { %s504_s1 = spop %503 }
 0x42f   :  { %328 = sst [smem:[#allocation7]] %s504_s1 }
 0x430   :  { %336 = dma.smem_to_hbm %s574_s21, 16, %s699_s2, [#allocation4]  }
 0x431   :  { %565 = dma.done.wait [#allocation4], 16  }
 0x432   :  { %566 = vsyncadd [#allocation4], 4294967280 }
 0x433   :  { %340 = sfence }
 0x434   :  { %341 = vsyncpa [#allocation3], 1 }
 0x435   :  { %342 = vsyncpa [#allocation6], 1 }
 0x436   :  { %343 = vsyncpa [#allocation4], 1 }

</bundles_post_ra>
